<compile_context>
chip_gen: v6e
topology: v6e:2x2x1
jax: 0.10.0
libtpu: 0.0.40
codegen_flags: <defaults>
</compile_context>

<pallas_src>
import math

import jax
import jax.numpy as jnp
from jax.experimental import pallas as pl
from jax.experimental.pallas import tpu as pltpu


INP_SIZE = 32          # consistent with Linear(inp_size, 64)
H1, H2, OUT = 64, 128, 8


def _round_up(n, m):
    return ((n + m - 1) // m) * m


def _actor_kernel(x_ref, w1_ref, b1_ref, w2_ref, b2_ref, w3_ref, b3_ref,
                  mean_ref, cov_ref):
    # x: (TB, 32) f32, w*: bf16 (in, out) [transposed vs torch], b*: (1, out) f32
    x = x_ref[...].astype(jnp.bfloat16)
    h1 = jnp.dot(x, w1_ref[...], preferred_element_type=jnp.float32) + b1_ref[...]
    h1 = jnp.maximum(h1, 0.0)                                        # ReLU (f32)
    h2 = jnp.dot(h1.astype(jnp.bfloat16), w2_ref[...],
                 preferred_element_type=jnp.float32) + b2_ref[...]
    h2 = jnp.maximum(h2, 0.0)                                        # ReLU (f32)
    op = jnp.dot(h2.astype(jnp.bfloat16), w3_ref[...],
                 preferred_element_type=jnp.float32) + b3_ref[...]
    # static column split: first 4 -> mean, last 4 -> exp(log-var) = diag(cov)
    mean_ref[...] = op[:, :4]
    cov_ref[...] = jnp.exp(op[:, 4:])


def actor_forward_batched(xs, params, *, block_b=128):
    """xs: (B, INP_SIZE) f32. Returns (mean (B,4) f32, cov_diag (B,4) f32)."""
    B, inp = xs.shape
    assert inp == INP_SIZE
    w1, b1, w2, b2, w3, b3 = params

    tile = min(block_b, _round_up(B, 8))      # sublane-aligned batch tile
    padded = _round_up(B, tile)
    x2d = xs.astype(jnp.float32)
    if padded != B:
        x2d = jnp.pad(x2d, ((0, padded - B), (0, 0)))

    def const_spec(arr):                      # weights stay resident across grid
        return pl.BlockSpec(arr.shape, lambda i: (0, 0))

    mean, cov = pl.pallas_call(
        _actor_kernel,
        out_shape=(jax.ShapeDtypeStruct((padded, 4), jnp.float32),
                   jax.ShapeDtypeStruct((padded, 4), jnp.float32)),
        grid=(padded // tile,),
        in_specs=[
            pl.BlockSpec((tile, INP_SIZE), lambda i: (i, 0)),
            const_spec(w1), const_spec(b1),
            const_spec(w2), const_spec(b2),
            const_spec(w3), const_spec(b3),
        ],
        out_specs=(
            pl.BlockSpec((tile, 4), lambda i: (i, 0)),
            pl.BlockSpec((tile, 4), lambda i: (i, 0)),
        ),
        compiler_params=pltpu.CompilerParams(
            dimension_semantics=("parallel",)),   # megacore sharding on v7x
    )(x2d, w1, b1, w2, b2, w3, b3)

    if padded != B:
        mean, cov = mean[:B], cov[:B]
    return mean, cov


def actor_forward(x, params):
    """Original torch semantics: x is (INP_SIZE,). Returns (mean (4,), cov_diag (4,))."""
    assert x.shape[0] == INP_SIZE
    mean, cov = actor_forward_batched(x.reshape(1, INP_SIZE), params, block_b=8)
    return mean[0], cov[0]


def _xavier_uniform(key, fan_in, fan_out):
    # torch.nn.init.xavier_uniform_ : U(-a, a), a = sqrt(6 / (fan_in + fan_out))
    a = math.sqrt(6.0 / (fan_in + fan_out))
    # stored transposed vs torch: (in, out); kept in bf16 for the MXU / DMA path
    w = jax.random.uniform(key, (fan_in, fan_out), jnp.float32, minval=-a, maxval=a)
    return w.astype(jnp.bfloat16)


def init_params(key):
    k1, k2, k3 = jax.random.split(key, 3)
    w1 = _xavier_uniform(k1, INP_SIZE, H1)
    b1 = jnp.zeros((1, H1), jnp.float32)
    w2 = _xavier_uniform(k2, H1, H2)
    b2 = jnp.zeros((1, H2), jnp.float32)
    w3 = _xavier_uniform(k3, H2, OUT)
    b3 = jnp.zeros((1, OUT), jnp.float32)
    return (w1, b1, w2, b2, w3, b3)


def _reference(xs, params):
    # same bf16-weight / f32-accumulate math as the kernel, in plain JAX
    w1, b1, w2, b2, w3, b3 = params
    x = xs.astype(jnp.bfloat16)
    h1 = jnp.maximum(jnp.dot(x, w1, preferred_element_type=jnp.float32) + b1, 0.0)
    h2 = jnp.maximum(jnp.dot(h1.astype(jnp.bfloat16), w2,
                             preferred_element_type=jnp.float32) + b2, 0.0)
    op = jnp.dot(h2.astype(jnp.bfloat16), w3,
                 preferred_element_type=jnp.float32) + b3
    return op[:, :4], jnp.exp(op[:, 4:])


if __name__ == "__main__":
    key = jax.random.PRNGKey(0)
    pkey, xkey = jax.random.split(key)
    params = init_params(pkey)

    # batched hot path: 256 rows -> 2 grid steps of 128 rows
    B = 256
    xs = jax.random.normal(xkey, (B, INP_SIZE), jnp.float32)

    mean, cov = actor_forward_batched(xs, params, block_b=128)
    jax.block_until_ready((mean, cov))

    ref_mean, ref_cov = _reference(xs, params)
    assert mean.shape == (B, 4) and cov.shape == (B, 4)
    assert jnp.allclose(mean, ref_mean, atol=1e-3, rtol=1e-3)
    assert jnp.allclose(cov, ref_cov, atol=1e-3, rtol=1e-3)

    # single-sample path (original module semantics)
    m1, c1 = actor_forward(xs[0], params)
    jax.block_until_ready((m1, c1))
    assert jnp.allclose(m1, ref_mean[0], atol=1e-3, rtol=1e-3)
    assert jnp.allclose(c1, ref_cov[0], atol=1e-3, rtol=1e-3)

    print("KERNEL_OK")
</pallas_src>

<mosaic_0001>
module attributes {stable_mosaic.version = 11 : i64} {
  func.func @_actor_kernel(%arg0: i32, %arg1: memref<128x32xf32, #tpu.memory_space<vmem>>, %arg2: memref<32x64xbf16, #tpu.memory_space<vmem>>, %arg3: memref<1x64xf32, #tpu.memory_space<vmem>>, %arg4: memref<64x128xbf16, #tpu.memory_space<vmem>>, %arg5: memref<1x128xf32, #tpu.memory_space<vmem>>, %arg6: memref<128x8xbf16, #tpu.memory_space<vmem>>, %arg7: memref<1x8xf32, #tpu.memory_space<vmem>>, %arg8: memref<128x4xf32, #tpu.memory_space<vmem>>, %arg9: memref<128x4xf32, #tpu.memory_space<vmem>>) attributes {dimension_semantics = [#tpu.dimension_semantics<parallel>], iteration_bounds = array<i64: 2>, scalar_prefetch = 0 : i64, scratch_operands = 0 : i64, tpu.core_type = #tpu.core_type<tc>, window_params = [{transform_indices = @transform_0, window_bounds = array<i64: 128, 32>}, {pipeline_mode = #tpu.pipeline_mode<synchronous>, transform_indices = @transform_1, window_bounds = array<i64: 32, 64>}, {pipeline_mode = #tpu.pipeline_mode<synchronous>, transform_indices = @transform_2, window_bounds = array<i64: 1, 64>}, {pipeline_mode = #tpu.pipeline_mode<synchronous>, transform_indices = @transform_3, window_bounds = array<i64: 64, 128>}, {pipeline_mode = #tpu.pipeline_mode<synchronous>, transform_indices = @transform_4, window_bounds = array<i64: 1, 128>}, {pipeline_mode = #tpu.pipeline_mode<synchronous>, transform_indices = @transform_5, window_bounds = array<i64: 128, 8>}, {pipeline_mode = #tpu.pipeline_mode<synchronous>, transform_indices = @transform_6, window_bounds = array<i64: 1, 8>}, {transform_indices = @transform_7, window_bounds = array<i64: 128, 4>}, {transform_indices = @transform_8, window_bounds = array<i64: 128, 4>}]} {
    %c0 = arith.constant 0 : index
    %c0_0 = arith.constant 0 : index
    %0 = vector.load %arg1[%c0, %c0_0] : memref<128x32xf32, #tpu.memory_space<vmem>>, vector<128x32xf32>
    %1 = arith.truncf %0 : vector<128x32xf32> to vector<128x32xbf16>
    %c0_1 = arith.constant 0 : index
    %c0_2 = arith.constant 0 : index
    %2 = vector.load %arg2[%c0_1, %c0_2] : memref<32x64xbf16, #tpu.memory_space<vmem>>, vector<32x64xbf16>
    %cst = arith.constant dense<0.000000e+00> : vector<128x64xf32>
    %3 = tpu.matmul %1, %2, %cst {dimension_numbers = #tpu.dot_dimension_numbers<[1], [0], [0], [1], [0, 0, 1, 1], [], []>} : vector<128x32xbf16>, vector<32x64xbf16>, vector<128x64xf32> -> vector<128x64xf32>
    %c0_3 = arith.constant 0 : index
    %c0_4 = arith.constant 0 : index
    %4 = vector.load %arg3[%c0_3, %c0_4] : memref<1x64xf32, #tpu.memory_space<vmem>>, vector<1x64xf32>
    %5 = vector.broadcast %4 : vector<1x64xf32> to vector<128x64xf32>
    %6 = arith.addf %3, %5 : vector<128x64xf32>
    %cst_5 = arith.constant 0.000000e+00 : f32
    %7 = vector.broadcast %cst_5 : f32 to vector<128x64xf32>
    %8 = arith.maximumf %6, %7 : vector<128x64xf32>
    %9 = arith.truncf %8 : vector<128x64xf32> to vector<128x64xbf16>
    %c0_6 = arith.constant 0 : index
    %c0_7 = arith.constant 0 : index
    %10 = vector.load %arg4[%c0_6, %c0_7] : memref<64x128xbf16, #tpu.memory_space<vmem>>, vector<64x128xbf16>
    %cst_8 = arith.constant dense<0.000000e+00> : vector<128x128xf32>
    %11 = tpu.matmul %9, %10, %cst_8 {dimension_numbers = #tpu.dot_dimension_numbers<[1], [0], [0], [1], [0, 0, 1, 1], [], []>} : vector<128x64xbf16>, vector<64x128xbf16>, vector<128x128xf32> -> vector<128x128xf32>
    %c0_9 = arith.constant 0 : index
    %c0_10 = arith.constant 0 : index
    %12 = vector.load %arg5[%c0_9, %c0_10] : memref<1x128xf32, #tpu.memory_space<vmem>>, vector<1x128xf32>
    %13 = vector.broadcast %12 : vector<1x128xf32> to vector<128x128xf32>
    %14 = arith.addf %11, %13 : vector<128x128xf32>
    %cst_11 = arith.constant 0.000000e+00 : f32
    %15 = vector.broadcast %cst_11 : f32 to vector<128x128xf32>
    %16 = arith.maximumf %14, %15 : vector<128x128xf32>
    %17 = arith.truncf %16 : vector<128x128xf32> to vector<128x128xbf16>
    %c0_12 = arith.constant 0 : index
    %c0_13 = arith.constant 0 : index
    %18 = vector.load %arg6[%c0_12, %c0_13] : memref<128x8xbf16, #tpu.memory_space<vmem>>, vector<128x8xbf16>
    %cst_14 = arith.constant dense<0.000000e+00> : vector<128x8xf32>
    %19 = tpu.matmul %17, %18, %cst_14 {dimension_numbers = #tpu.dot_dimension_numbers<[1], [0], [0], [1], [0, 0, 1, 1], [], []>} : vector<128x128xbf16>, vector<128x8xbf16>, vector<128x8xf32> -> vector<128x8xf32>
    %c0_15 = arith.constant 0 : index
    %c0_16 = arith.constant 0 : index
    %20 = vector.load %arg7[%c0_15, %c0_16] : memref<1x8xf32, #tpu.memory_space<vmem>>, vector<1x8xf32>
    %21 = vector.broadcast %20 : vector<1x8xf32> to vector<128x8xf32>
    %22 = arith.addf %19, %21 : vector<128x8xf32>
    %23 = vector.extract_strided_slice %22 {offsets = [0, 0], sizes = [128, 4], strides = [1, 1]} : vector<128x8xf32> to vector<128x4xf32>
    %c0_17 = arith.constant 0 : index
    %c0_18 = arith.constant 0 : index
    %24 = vector.load %arg8[%c0_17, %c0_18] : memref<128x4xf32, #tpu.memory_space<vmem>>, vector<128x4xf32>
    tpu.vector_store %arg8[%c0_17, %c0_18], %23 {strides = array<i32>} : memref<128x4xf32, #tpu.memory_space<vmem>>, vector<128x4xf32>,
    %25 = vector.extract_strided_slice %22 {offsets = [0, 4], sizes = [128, 4], strides = [1, 1]} : vector<128x8xf32> to vector<128x4xf32>
    %26 = math.exp %25 : vector<128x4xf32>
    %c0_19 = arith.constant 0 : index
    %c0_20 = arith.constant 0 : index
    %27 = vector.load %arg9[%c0_19, %c0_20] : memref<128x4xf32, #tpu.memory_space<vmem>>, vector<128x4xf32>
    tpu.vector_store %arg9[%c0_19, %c0_20], %26 {strides = array<i32>} : memref<128x4xf32, #tpu.memory_space<vmem>>, vector<128x4xf32>,
    return
  }
  func.func @transform_0(%arg0: i32) -> (i32, i32) {
    %c0_i32 = arith.constant 0 : i32
    %c0_i32_0 = arith.constant 0 : i32
    return %arg0, %c0_i32 : i32, i32
  }
  func.func @transform_1(%arg0: i32) -> (i32, i32) {
    %c0_i32 = arith.constant 0 : i32
    %c0_i32_0 = arith.constant 0 : i32
    %c0_i32_1 = arith.constant 0 : i32
    return %c0_i32, %c0_i32_0 : i32, i32
  }
  func.func @transform_2(%arg0: i32) -> (i32, i32) {
    %c0_i32 = arith.constant 0 : i32
    %c0_i32_0 = arith.constant 0 : i32
    %c0_i32_1 = arith.constant 0 : i32
    return %c0_i32, %c0_i32_0 : i32, i32
  }
  func.func @transform_3(%arg0: i32) -> (i32, i32) {
    %c0_i32 = arith.constant 0 : i32
    %c0_i32_0 = arith.constant 0 : i32
    %c0_i32_1 = arith.constant 0 : i32
    return %c0_i32, %c0_i32_0 : i32, i32
  }
  func.func @transform_4(%arg0: i32) -> (i32, i32) {
    %c0_i32 = arith.constant 0 : i32
    %c0_i32_0 = arith.constant 0 : i32
    %c0_i32_1 = arith.constant 0 : i32
    return %c0_i32, %c0_i32_0 : i32, i32
  }
  func.func @transform_5(%arg0: i32) -> (i32, i32) {
    %c0_i32 = arith.constant 0 : i32
    %c0_i32_0 = arith.constant 0 : i32
    %c0_i32_1 = arith.constant 0 : i32
    return %c0_i32, %c0_i32_0 : i32, i32
  }
  func.func @transform_6(%arg0: i32) -> (i32, i32) {
    %c0_i32 = arith.constant 0 : i32
    %c0_i32_0 = arith.constant 0 : i32
    %c0_i32_1 = arith.constant 0 : i32
    return %c0_i32, %c0_i32_0 : i32, i32
  }
  func.func @transform_7(%arg0: i32) -> (i32, i32) {
    %c0_i32 = arith.constant 0 : i32
    %c0_i32_0 = arith.constant 0 : i32
    return %arg0, %c0_i32 : i32, i32
  }
  func.func @transform_8(%arg0: i32) -> (i32, i32) {
    %c0_i32 = arith.constant 0 : i32
    %c0_i32_0 = arith.constant 0 : i32
    return %arg0, %c0_i32 : i32, i32
  }
}

</mosaic_0001>

<bundles_post_ra>
// kernel: tpu_custom_call.1
= control target key start
LH: loop header
LB: loop body
LE: loop exit
PB: predicated region body
PF: predicated region fallthrough
CT: control target
= control target key end

     0   :  { %s1374_s27 = smov 0   ;;  %s1610_s0 = inlined_call_operand.vmem [shape: f32[256,32], index: 0, kind: input, shape index: {}]   ;;  %s1611_s1 = inlined_call_operand.vmem [shape: bf16[32,64], index: 1, kind: input, shape index: {}]   ;;  %s1612_s2 = inlined_call_operand.vmem [shape: f32[1,64], index: 2, kind: input, shape index: {}]   ;;  %s1613_s3 = inlined_call_operand.vmem [shape: bf16[64,128], index: 3, kind: input, shape index: {}]   ;;  %s1614_s4 = inlined_call_operand.vmem [shape: f32[1,128], index: 4, kind: input, shape index: {}]   ;;  %s1615_s5 = inlined_call_operand.vmem [shape: bf16[128,8], index: 5, kind: input, shape index: {}]   ;;  %s1616_s6 = inlined_call_operand.vmem [shape: f32[1,8], index: 6, kind: input, shape index: {}]   ;;  %s1617_s7 = inlined_call_operand.vmem [shape: f32[256,4], index: 7, kind: output, shape index: {0}]   ;;  %s1618_s8 = inlined_call_operand.vmem [shape: f32[256,4], index: 8, kind: output, shape index: {1}]  }
   0x1 LB: > { %s1089_s28 = sadd.s32 4294967295, %s1326_s27   ;;  %p1093_p0 = scmp.ge.s32.totalorder %s1326_s27, 1  ;;  %s1326_s27 = sphi %s1374_s27, %s19_s27  }
   0x2   : > { %p266_p1 = scmp.lt.s32.totalorder %s1326_s27, 3 }
   0x4   : > { %p267_p2 = pnand %p1093_p0, %p266_p1 }
   0x5   : > { %s1094_s9 = sshll.u32 (!%p267_p2), %s1089_s28, 4  ;;  %s1328_s30 = smov (!%p267_p2), 124  }
   0x6   : > { %270 = sbr.rel (%p267_p2) target bundleno = 793 (0x319), region = 48  ;;  %p306_p3 = scmp.lt.s32.totalorder (!%p267_p2), %s1094_s9, 31 }
   0xb   : > { %v1274_v0 = vld [vmem:[%s1611_s1 + $0x8] sm:$0xff]   ;;  %v1275_v1 = vld [vmem:[%s1611_s1] sm:$0xff]   ;;  %v1276_v2 = vld [vmem:[%s1613_s3 + $0x18] sm:$0xff]   ;;  %s1620_s9 = smov (!%p306_p3, %s1094_s9), 31  ;;  %vm371_vm0 = vcmask 261120   ;;  %vm556_vm1 = vcmask 523264  }
   0xc   : > { %1173 = vmatprep.subr.bf16.mxu0 %v1274_v0  ;;  %1193 = vmatprep.subr.bf16.mxu1 %v1276_v2  ;;  %s1391_s14 = sshll.u32 %s1620_s9, 3  ;;  %v1277_v27 = vld [vmem:[%s1613_s3 + $0x10] sm:$0xff]   ;;  %v1278_v28 = vld [vmem:[%s1613_s3 + $0x8] sm:$0xff]   ;;  %v1279_v29 = vld [vmem:[%s1613_s3] sm:$0xff]   ;;  %vm870_vm2 = vcmask 31744  }
   0xd   : > { %1174 = vmatpush3.bf16.msra.mxu0 %v1274_v0  ;;  %1194 = vmatpush3.bf16.msra.mxu1 %v1276_v2  ;;  %s1397_s17 = scalar_lea.vmem %s1610_s0, %s1391_s14  ;;  %v1280_v30 = vld [vmem:[%s1615_s5 + $0x38] sm:$0xff]   ;;  %v1281_v31 = vld [vmem:[%s1615_s5 + $0x30] sm:$0xff]   ;;  %v1282_v32 = vld [vmem:[%s1615_s5 + $0x28] sm:$0xff]   ;;  %s1503_s29 = scalar_lea.vmem %s1617_s7, %s1391_s14 }
   0xe   : > { %1175 = vmatprep.subr.bf16.mxu0 %v1275_v1  ;;  %v324_v3 = vld [vmem:[%s1397_s17] sm:$0xff]  ;;  %v325_v4 = vld [vmem:[%s1397_s17 + $0x8] sm:$0xff]  ;;  %v326_v5 = vld [vmem:[%s1397_s17 + $0x10] sm:$0xff]  ;;  %1195 = vmatprep.subr.bf16.mxu1 %v1277_v27  ;;  %s1573_s11 = scalar_lea.vmem %s1618_s8, %s1391_s14 }
   0xf   : > { %v340_v6 = vpack.c.bf16 %v325_v4, %v324_v3  ;;  %v327_v7 = vld [vmem:[%s1397_s17 + $0x18] sm:$0xff]  ;;  %v328_v8 = vld [vmem:[%s1397_s17 + $0x20] sm:$0xff]  ;;  %v329_v9 = vld [vmem:[%s1397_s17 + $0x28] sm:$0xff] }
  0x10   : > { %v341_v10 = vpack.c.bf16 %v327_v7, %v326_v5  ;;  %v342_v11 = vpack.c.bf16 %v329_v9, %v328_v8  ;;  %v330_v12 = vld [vmem:[%s1397_s17 + $0x30] sm:$0xff]  ;;  %v331_v13 = vld [vmem:[%s1397_s17 + $0x38] sm:$0xff]  ;;  %v332_v14 = vld [vmem:[%s1397_s17 + $0x40] sm:$0xff] }
  0x11   : > { %1176 = vmatpush3.bf16.msra.mxu0 %v1275_v1  ;;  %1177 = vmatprep.mubr.msk.bf16.mxu0 %vm371_vm0, %v340_v6  ;;  %v333_v15 = vld [vmem:[%s1397_s17 + $0x48] sm:$0xff]  ;;  %v343_v16 = vpack.c.bf16 %v331_v13, %v330_v12  ;;  %v334_v18 = vld [vmem:[%s1397_s17 + $0x50] sm:$0xff]  ;;  %v335_v19 = vld [vmem:[%s1397_s17 + $0x58] sm:$0xff] }
  0x12   : > { %v344_v17 = vpack.c.bf16 %v333_v15, %v332_v14  ;;  %v336_v20 = vld [vmem:[%s1397_s17 + $0x60] sm:$0xff]  ;;  %v337_v21 = vld [vmem:[%s1397_s17 + $0x68] sm:$0xff]  ;;  %v345_v22 = vpack.c.bf16 %v335_v19, %v334_v18  ;;  %v338_v24 = vld [vmem:[%s1397_s17 + $0x70] sm:$0xff]  ;;  %1196 = vmatpush3.bf16.msra.mxu1 %v1277_v27  ;;  %1217 = vmatprep.subr.bf16.mxu0 %v1280_v30 }
  0x13   : > { %v346_v23 = vpack.c.bf16 %v337_v21, %v336_v20  ;;  %v339_v25 = vld [vmem:[%s1397_s17 + $0x78] sm:$0xff]  ;;  %1197 = vmatprep.subr.bf16.mxu1 %v1278_v28  ;;  %v1283_v33 = vld [vmem:[%s1615_s5 + $0x20] sm:$0xff]  }
  0x14   : > { %1178 = vmatmul.mubr.msk.bf16.vlgmr.msra.gmra.mxu0 %vm371_vm0, %v341_v10  ;;  %v347_v26 = vpack.c.bf16 %v339_v25, %v338_v24  ;;  %v1447_v34 = vld [vmem:[%s1615_s5 + $0x18] sm:$0xff]   ;;  %v1454_v37 = vld [vmem:[%s1612_s2] ss:$0 sm:$0xff] }
  0x15   : > { %1181 = vmatprep.mubr.msk.bf16.mxu0 %vm371_vm0, %v342_v11  ;;  %1218 = vmatpush3.bf16.msra.mxu0 %v1280_v30 }
  0x16   : > { %1198 = vmatpush3.bf16.msra.mxu1 %v1278_v28  ;;  %1219 = vmatprep.subr.bf16.mxu0 %v1281_v31  ;;  %v1285_v28 = vld [vmem:[%s1615_s5 + $0x10] sm:$0xff]  }
  0x17   : > { %1199 = vmatprep.subr.bf16.mxu1 %v1279_v29 }
  0x19   : > { %1220 = vmatpush3.bf16.msra.mxu0 %v1281_v31 }
  0x1a   : > { %1200 = vmatpush3.bf16.msra.mxu1 %v1279_v29  ;;  %1221 = vmatprep.subr.bf16.mxu0 %v1282_v32  ;;  %v1286_v29 = vld [vmem:[%s1615_s5 + $0x8] sm:$0xff]  }
  0x1b   : > { %1249 = vmatprep.subr.bf16.mxu1 %v1280_v30 }
  0x1c   : > { %1182 = vmatmul.mubr.msk.bf16.gmra.mxu0 %vm371_vm0, %v343_v16 }
  0x1d   : > { %1185 = vmatprep.mubr.msk.bf16.mxu0 %vm371_vm0, %v344_v17  ;;  %1222 = vmatpush3.bf16.msra.mxu0 %v1282_v32 }
  0x1e   : > { %1223 = vmatprep.subr.bf16.mxu0 %v1283_v33 }
  0x21   : > { %1224 = vmatpush3.bf16.msra.mxu0 %v1283_v33 }
  0x22   : > { %1225 = vmatprep.subr.bf16.mxu0 %v1447_v34 }
  0x24   : > { %1186 = vmatmul.mubr.msk.bf16.gmra.mxu0 %vm371_vm0, %v345_v22 }
  0x25   : > { %1189 = vmatprep.mubr.msk.bf16.mxu0 %vm371_vm0, %v346_v23  ;;  %1226 = vmatpush3.bf16.msra.mxu0 %v1447_v34 }
  0x26   : > { %1227 = vmatprep.subr.bf16.mxu0 %v1285_v28 }
  0x29   : > { %1228 = vmatpush3.bf16.msra.mxu0 %v1285_v28 }
  0x2a   : > { %1229 = vmatprep.subr.bf16.mxu0 %v1286_v29 }
  0x2c   : > { %1190 = vmatmul.mubr.msk.bf16.gmra.mxu0 %vm371_vm0, %v347_v26 }
  0x2d   : > { %1230 = vmatpush3.bf16.msra.mxu0 %v1286_v29 }
  0xd4   : > { %v1179_v35 = vpop.f32.mrf.mxu0 }
  0xd5   : > { %v439_v41 = vadd.f32 %v1179_v35, %v1454_v37 }
  0xd6   : > { %v430_v36 = vpop.f32.mrf.mxu0 }
  0xd7   : > { %v431_v39 = vadd.f32 %v1454_v37, %v430_v36  ;;  %v495_v48 = vmax.f32 %v439_v41, 0.0 }
  0xd8   : > { %v1180_v38 = vpop.f32.mrf.mxu0 }
  0xd9   : > { %v442_v40 = vadd.f32 %v1180_v38, %v1454_v37  ;;  %v493_v46 = vmax.f32 %v431_v39, 0.0 }
  0xda   : > { %v433_v42 = vpop.f32.mrf.mxu0 }
  0xdb   : > { %v434_v43 = vadd.f32 %v1454_v37, %v433_v42  ;;  %v496_v44 = vmax.f32 %v442_v40, 0.0 }
  0xdc   : > { %v1183_v45 = vpop.f32.mrf.mxu0 }
  0xdd   : > { %v494_v47 = vmax.f32 %v434_v43, 0.0  ;;  %v510_v51 = vpack.c.bf16 %v496_v44, %v495_v48  ;;  %v455_v55 = vadd.f32 %v1183_v45, %v1454_v37 }
  0xde   : > { %v446_v49 = vpop.f32.mrf.mxu0 }
  0xdf   : > { %v509_v50 = vpack.c.bf16 %v494_v47, %v493_v46  ;;  %v447_v53 = vadd.f32 %v1454_v37, %v446_v49  ;;  %v499_v62 = vmax.f32 %v455_v55, 0.0 }
  0xe0   : > { %v1184_v52 = vpop.f32.mrf.mxu0 }
  0xe1   : > { %v458_v54 = vadd.f32 %v1184_v52, %v1454_v37  ;;  %1201 = vmatprep.mubr.msk.bf16.mxu1 %vm556_vm1, %v509_v50  ;;  %v497_v60 = vmax.f32 %v447_v53, 0.0 }
  0xe2   : > { %v449_v56 = vpop.f32.mrf.mxu0  ;;  %1202 = vmatmul.mubr.msk.bf16.vlgmr.msra.gmra.mxu1 %vm556_vm1, %v510_v51 }
  0xe3   : > { %v450_v57 = vadd.f32 %v1454_v37, %v449_v56  ;;  %1257 = vmatpush3.bf16.msra.mxu1 %v1280_v30  ;;  %v500_v58 = vmax.f32 %v458_v54, 0.0  ;;  %v1287_v30 = vld [vmem:[%s1615_s5] sm:$0xff]  }
  0xe4   : > { %v1187_v59 = vpop.f32.mrf.mxu0  ;;  %1250 = vmatprep.subr.bf16.mxu1 %v1281_v31  ;;  %1231 = vmatprep.subr.bf16.mxu0 %v1287_v30 }
  0xe5   : > { %v498_v61 = vmax.f32 %v450_v57, 0.0  ;;  %v512_v1 = vpack.c.bf16 %v500_v58, %v499_v62  ;;  %v471_v5 = vadd.f32 %v1187_v59, %v1454_v37  ;;  %1232 = vmatpush3.bf16.msra.mxu0 %v1287_v30 }
  0xe6   : > { %v462_v63 = vpop.f32.mrf.mxu0 }
  0xe7   : > { %v511_v0 = vpack.c.bf16 %v498_v61, %v497_v60  ;;  %1258 = vmatpush3.bf16.msra.mxu1 %v1281_v31  ;;  %v463_v3 = vadd.f32 %v1454_v37, %v462_v63  ;;  %v503_v12 = vmax.f32 %v471_v5, 0.0 }
  0xe8   : > { %v1188_v2 = vpop.f32.mrf.mxu0  ;;  %1251 = vmatprep.subr.bf16.mxu1 %v1282_v32 }
  0xe9   : > { %v474_v4 = vadd.f32 %v1188_v2, %v1454_v37  ;;  %1205 = vmatprep.mubr.msk.bf16.mxu1 %vm556_vm1, %v511_v0  ;;  %v501_v10 = vmax.f32 %v463_v3, 0.0 }
  0xea   : > { %v465_v6 = vpop.f32.mrf.mxu0  ;;  %1206 = vmatmul.mubr.msk.bf16.gmra.mxu1 %vm556_vm1, %v512_v1 }
  0xeb   : > { %v466_v7 = vadd.f32 %v1454_v37, %v465_v6  ;;  %1259 = vmatpush3.bf16.msra.mxu1 %v1282_v32  ;;  %v504_v8 = vmax.f32 %v474_v4, 0.0 }
  0xec   : > { %v1191_v9 = vpop.f32.mrf.mxu0  ;;  %1252 = vmatprep.subr.bf16.mxu1 %v1283_v33 }
  0xed   : > { %v502_v11 = vmax.f32 %v466_v7, 0.0  ;;  %v514_v15 = vpack.c.bf16 %v504_v8, %v503_v12  ;;  %v487_v19 = vadd.f32 %v1191_v9, %v1454_v37 }
  0xee   : > { %v478_v13 = vpop.f32.mrf.mxu0 }
  0xef   : > { %v513_v14 = vpack.c.bf16 %v502_v11, %v501_v10  ;;  %1260 = vmatpush3.bf16.msra.mxu1 %v1283_v33  ;;  %v479_v17 = vadd.f32 %v1454_v37, %v478_v13  ;;  %v507_v25 = vmax.f32 %v487_v19, 0.0  ;;  %v1111_v33 = vld [vmem:[%s1614_s4] ss:$0 sm:$0xff] }
  0xf0   : > { %v1192_v16 = vpop.f32.mrf.mxu0  ;;  %1253 = vmatprep.subr.bf16.mxu1 %v1447_v34 }
  0xf1   : > { %v490_v18 = vadd.f32 %v1192_v16, %v1454_v37  ;;  %1209 = vmatprep.mubr.msk.bf16.mxu1 %vm556_vm1, %v513_v14  ;;  %v505_v23 = vmax.f32 %v479_v17, 0.0 }
  0xf2   : > { %v481_v20 = vpop.f32.mrf.mxu0  ;;  %1210 = vmatmul.mubr.msk.bf16.gmra.mxu1 %vm556_vm1, %v514_v15 }
  0xf3   : > { %v482_v21 = vadd.f32 %v1454_v37, %v481_v20  ;;  %1261 = vmatpush3.bf16.msra.mxu1 %v1447_v34  ;;  %v508_v22 = vmax.f32 %v490_v18, 0.0 }
  0xf4   : > { %1254 = vmatprep.subr.bf16.mxu1 %v1285_v28 }
  0xf5   : > { %v506_v24 = vmax.f32 %v482_v21, 0.0  ;;  %v516_v27 = vpack.c.bf16 %v508_v22, %v507_v25 }
  0xf7   : > { %v515_v26 = vpack.c.bf16 %v506_v24, %v505_v23  ;;  %1262 = vmatpush3.bf16.msra.mxu1 %v1285_v28  ;;  %v1497_v24 = vld [vmem:[%s1616_s6] ss:$0 sm:$0xff] }
  0xf8   : > { %1255 = vmatprep.subr.bf16.mxu1 %v1286_v29 }
  0xf9   : > { %1213 = vmatprep.mubr.msk.bf16.mxu1 %vm556_vm1, %v515_v26 }
  0xfa   : > { %1214 = vmatmul.mubr.msk.bf16.gmra.mxu1 %vm556_vm1, %v516_v27 }
  0xfb   : > { %1263 = vmatpush3.bf16.msra.mxu1 %v1286_v29 }
  0xfc   : > { %1256 = vmatprep.subr.bf16.mxu1 %v1287_v30 }
  0xff   : > { %1264 = vmatpush3.bf16.msra.mxu1 %v1287_v30 }
 0x1a2   : > { %v1203_v31 = vpop.f32.mrf.mxu1 }
 0x1a3   : > { %v624_v37 = vadd.f32 %v1203_v31, %v1111_v33 }
 0x1a4   : > { %v615_v32 = vpop.f32.mrf.mxu1 }
 0x1a5   : > { %v616_v35 = vadd.f32 %v1111_v33, %v615_v32  ;;  %v680_v44 = vmax.f32 %v624_v37, 0.0 }
 0x1a6   : > { %v1204_v34 = vpop.f32.mrf.mxu1 }
 0x1a7   : > { %v627_v36 = vadd.f32 %v1204_v34, %v1111_v33  ;;  %v678_v42 = vmax.f32 %v616_v35, 0.0 }
 0x1a8   : > { %v618_v38 = vpop.f32.mrf.mxu1 }
 0x1a9   : > { %v619_v39 = vadd.f32 %v1111_v33, %v618_v38  ;;  %v681_v40 = vmax.f32 %v627_v36, 0.0 }
 0x1aa   : > { %v1207_v41 = vpop.f32.mrf.mxu1 }
 0x1ab   : > { %v679_v43 = vmax.f32 %v619_v39, 0.0  ;;  %v695_v47 = vpack.c.bf16 %v681_v40, %v680_v44  ;;  %v640_v51 = vadd.f32 %v1207_v41, %v1111_v33 }
 0x1ac   : > { %v631_v45 = vpop.f32.mrf.mxu1 }
 0x1ad   : > { %v694_v46 = vpack.c.bf16 %v679_v43, %v678_v42  ;;  %v632_v49 = vadd.f32 %v1111_v33, %v631_v45  ;;  %v684_v58 = vmax.f32 %v640_v51, 0.0 }
 0x1ae   : > { %v1208_v48 = vpop.f32.mrf.mxu1 }
 0x1af   : > { %v643_v50 = vadd.f32 %v1208_v48, %v1111_v33  ;;  %1233 = vmatprep.mubr.bf16.mxu0 %v694_v46  ;;  %v682_v56 = vmax.f32 %v632_v49, 0.0 }
 0x1b0   : > { %v634_v52 = vpop.f32.mrf.mxu1  ;;  %1234 = vmatmul.mubr.bf16.vlgmr.msra.gmra.mxu0 %v695_v47 }
 0x1b1   : > { %v635_v53 = vadd.f32 %v1111_v33, %v634_v52  ;;  %v685_v54 = vmax.f32 %v643_v50, 0.0 }
 0x1b2   : > { %v1211_v55 = vpop.f32.mrf.mxu1 }
 0x1b3   : > { %v683_v57 = vmax.f32 %v635_v53, 0.0  ;;  %v697_v61 = vpack.c.bf16 %v685_v54, %v684_v58  ;;  %v656_v1 = vadd.f32 %v1211_v55, %v1111_v33 }
 0x1b4   : > { %v647_v59 = vpop.f32.mrf.mxu1 }
 0x1b5   : > { %v696_v60 = vpack.c.bf16 %v683_v57, %v682_v56  ;;  %v648_v63 = vadd.f32 %v1111_v33, %v647_v59  ;;  %v688_v8 = vmax.f32 %v656_v1, 0.0 }
 0x1b6   : > { %v1212_v62 = vpop.f32.mrf.mxu1 }
 0x1b7   : > { %v659_v0 = vadd.f32 %v1212_v62, %v1111_v33  ;;  %1237 = vmatprep.mubr.bf16.mxu0 %v696_v60  ;;  %v686_v6 = vmax.f32 %v648_v63, 0.0 }
 0x1b8   : > { %v650_v2 = vpop.f32.mrf.mxu1  ;;  %1238 = vmatmul.mubr.bf16.gmra.mxu0 %v697_v61 }
 0x1b9   : > { %v651_v3 = vadd.f32 %v1111_v33, %v650_v2  ;;  %v689_v4 = vmax.f32 %v659_v0, 0.0 }
 0x1ba   : > { %v1215_v5 = vpop.f32.mrf.mxu1 }
 0x1bb   : > { %v687_v7 = vmax.f32 %v651_v3, 0.0  ;;  %v699_v11 = vpack.c.bf16 %v689_v4, %v688_v8  ;;  %v672_v15 = vadd.f32 %v1215_v5, %v1111_v33 }
 0x1bc   : > { %v663_v9 = vpop.f32.mrf.mxu1 }
 0x1bd   : > { %v698_v10 = vpack.c.bf16 %v687_v7, %v686_v6  ;;  %v664_v13 = vadd.f32 %v1111_v33, %v663_v9  ;;  %v692_v21 = vmax.f32 %v672_v15, 0.0 }
 0x1be   : > { %v1216_v12 = vpop.f32.mrf.mxu1 }
 0x1bf   : > { %v675_v14 = vadd.f32 %v1216_v12, %v1111_v33  ;;  %1241 = vmatprep.mubr.bf16.mxu0 %v698_v10  ;;  %v690_v19 = vmax.f32 %v664_v13, 0.0 }
 0x1c0   : > { %v666_v16 = vpop.f32.mrf.mxu1  ;;  %1242 = vmatmul.mubr.bf16.gmra.mxu0 %v699_v11 }
 0x1c1   : > { %v667_v17 = vadd.f32 %v1111_v33, %v666_v16  ;;  %v693_v18 = vmax.f32 %v675_v14, 0.0 }
 0x1c3   : > { %v691_v20 = vmax.f32 %v667_v17, 0.0  ;;  %v701_v23 = vpack.c.bf16 %v693_v18, %v692_v21 }
 0x1c5   : > { %v700_v22 = vpack.c.bf16 %v691_v20, %v690_v19 }
 0x1c7   : > { %1245 = vmatprep.mubr.bf16.mxu1 %v700_v22 }
 0x1c8   : > { %1246 = vmatmul.mubr.bf16.vlgmr.msra.gmra.mxu1 %v701_v23 }
 0x270   : > { %v1235_v25 = vpop.f32.mrf.mxu0 }
 0x271   : > { %v816_v26 = vadd.f32 %v1235_v25, %v1497_v24 }
 0x272   : > { %v807_v27 = vpop.f32.mrf.mxu0 }
 0x273   : > { %873 = vst.msk [vmem:[%s1503_s29 + $0x10] sm:$0xff] %vm870_vm2, %v816_v26  ;;  %v891_v28 = vmul.f32 1.442695, %v816_v26  ;;  %v808_v29 = vadd.f32 %v1497_v24, %v807_v27 }
 0x274   : > { %v1236_v30 = vpop.f32.mrf.mxu0 }
 0x275   : > { %1288 = vpow2.f32 %v891_v28  ;;  %871 = vst.msk [vmem:[%s1503_s29] sm:$0xff] %vm870_vm2, %v808_v29  ;;  %v887_v31 = vmul.f32 1.442695, %v808_v29  ;;  %v819_v32 = vadd.f32 %v1236_v30, %v1497_v24 }
 0x276   : > { %v810_v33 = vpop.f32.mrf.mxu0 }
 0x277   : > { %1290 = vpow2.f32 %v887_v31  ;;  %874 = vst.msk [vmem:[%s1503_s29 + $0x18] sm:$0xff] %vm870_vm2, %v819_v32  ;;  %v893_v34 = vmul.f32 1.442695, %v819_v32  ;;  %v811_v35 = vadd.f32 %v1497_v24, %v810_v33 }
 0x278   : > { %v1239_v36 = vpop.f32.mrf.mxu0 }
 0x279   : > { %1292 = vpow2.f32 %v893_v34  ;;  %872 = vst.msk [vmem:[%s1503_s29 + $0x8] sm:$0xff] %vm870_vm2, %v811_v35  ;;  %v889_v37 = vmul.f32 1.442695, %v811_v35  ;;  %v832_v38 = vadd.f32 %v1239_v36, %v1497_v24 }
 0x27a   : > { %v823_v39 = vpop.f32.mrf.mxu0 }
 0x27b   : > { %1294 = vpow2.f32 %v889_v37  ;;  %877 = vst.msk [vmem:[%s1503_s29 + $0x30] sm:$0xff] %vm870_vm2, %v832_v38  ;;  %v899_v40 = vmul.f32 1.442695, %v832_v38  ;;  %v824_v41 = vadd.f32 %v1497_v24, %v823_v39 }
 0x27c   : > { %v1240_v42 = vpop.f32.mrf.mxu0 }
 0x27d   : > { %875 = vst.msk [vmem:[%s1503_s29 + $0x20] sm:$0xff] %vm870_vm2, %v824_v41  ;;  %v835_v43 = vadd.f32 %v1240_v42, %v1497_v24  ;;  %1296 = vpow2.f32 %v899_v40  ;;  %v895_v45 = vmul.f32 1.442695, %v824_v41 }
 0x27e   : > { %v826_v44 = vpop.f32.mrf.mxu0 }
 0x27f   : > { %878 = vst.msk [vmem:[%s1503_s29 + $0x38] sm:$0xff] %vm870_vm2, %v835_v43  ;;  %v901_v46 = vmul.f32 1.442695, %v835_v43  ;;  %v827_v47 = vadd.f32 %v1497_v24, %v826_v44 }
 0x280   : > { %v1243_v48 = vpop.f32.mrf.mxu0 }
 0x281   : > { %1298 = vpow2.f32 %v901_v46  ;;  %876 = vst.msk [vmem:[%s1503_s29 + $0x28] sm:$0xff] %vm870_vm2, %v827_v47  ;;  %v897_v49 = vmul.f32 1.442695, %v827_v47  ;;  %v848_v50 = vadd.f32 %v1243_v48, %v1497_v24 }
 0x282   : > { %v1289_v51 = vpop.eup %1288  ;;  %v839_v52 = vpop.f32.mrf.mxu0  ;;  %1300 = vpow2.f32 %v895_v45 }
 0x283   : > { %881 = vst.msk [vmem:[%s1503_s29 + $0x50] sm:$0xff] %vm870_vm2, %v848_v50  ;;  %v907_v53 = vmul.f32 1.442695, %v848_v50  ;;  %v840_v54 = vadd.f32 %v1497_v24, %v839_v52  ;;  %939 = vrot.lane.b32.xlu1 %v1289_v51, %s1328_s30  ;;  %1302 = vpow2.f32 %v897_v49 }
 0x284   : > { %v1291_v55 = vpop.eup %1290  ;;  %v1244_v56 = vpop.f32.mrf.mxu0 }
 0x285   : > { %879 = vst.msk [vmem:[%s1503_s29 + $0x40] sm:$0xff] %vm870_vm2, %v840_v54  ;;  %v851_v57 = vadd.f32 %v1244_v56, %v1497_v24  ;;  %935 = vrot.lane.b32.xlu0 %v1291_v55, %s1328_s30  ;;  %1304 = vpow2.f32 %v907_v53  ;;  %v903_v60 = vmul.f32 1.442695, %v840_v54 }
 0x286   : > { %v1293_v58 = vpop.eup %1292  ;;  %v842_v59 = vpop.f32.mrf.mxu0 }
 0x287   : > { %882 = vst.msk [vmem:[%s1503_s29 + $0x58] sm:$0xff] %vm870_vm2, %v851_v57  ;;  %v909_v61 = vmul.f32 1.442695, %v851_v57  ;;  %v843_v62 = vadd.f32 %v1497_v24, %v842_v59  ;;  %941 = vrot.lane.b32.xlu1 %v1293_v58, %s1328_s30 }
 0x288   : > { %v1295_v63 = vpop.eup %1294  ;;  %v1247_v0 = vpop.f32.mrf.mxu1 }
 0x289   : > { %1306 = vpow2.f32 %v909_v61  ;;  %880 = vst.msk [vmem:[%s1503_s29 + $0x48] sm:$0xff] %vm870_vm2, %v843_v62  ;;  %v905_v1 = vmul.f32 1.442695, %v843_v62  ;;  %v864_v2 = vadd.f32 %v1247_v0, %v1497_v24  ;;  %937 = vrot.lane.b32.xlu0 %v1295_v63, %s1328_s30 }
 0x28a   : > { %v855_v3 = vpop.f32.mrf.mxu1  ;;  %1308 = vpow2.f32 %v903_v60  ;;  %v1297_v5 = vpop.eup %1296 }
 0x28b   : > { %885 = vst.msk [vmem:[%s1503_s29 + $0x70] sm:$0xff] %vm870_vm2, %v864_v2  ;;  %v856_v4 = vadd.f32 %v1497_v24, %v855_v3  ;;  %1310 = vpow2.f32 %v905_v1  ;;  %v915_v10 = vmul.f32 1.442695, %v864_v2 }
 0x28c   : > { %v1248_v6 = vpop.f32.mrf.mxu1 }
 0x28d   : > { %883 = vst.msk [vmem:[%s1503_s29 + $0x60] sm:$0xff] %vm870_vm2, %v856_v4  ;;  %v911_v7 = vmul.f32 1.442695, %v856_v4  ;;  %v867_v8 = vadd.f32 %v1248_v6, %v1497_v24  ;;  %947 = vrot.lane.b32.xlu0 %v1297_v5, %s1328_s30 }
 0x28e   : > { %v1299_v9 = vpop.eup %1298  ;;  %v858_v11 = vpop.f32.mrf.mxu1 }
 0x28f   : > { %1312 = vpow2.f32 %v911_v7  ;;  %886 = vst.msk [vmem:[%s1503_s29 + $0x78] sm:$0xff] %vm870_vm2, %v867_v8  ;;  %v859_v12 = vadd.f32 %v1497_v24, %v858_v11  ;;  %949 = vrot.lane.b32.xlu1 %v1299_v9, %s1328_s30  ;;  %v1301_v13 = vpop.eup %1300  ;;  %v917_v16 = vmul.f32 1.442695, %v867_v8 }
 0x290   : > { %v1303_v15 = vpop.eup %1302  ;;  %1314 = vpow2.f32 %v915_v10 }
 0x291   : > { %884 = vst.msk [vmem:[%s1503_s29 + $0x68] sm:$0xff] %vm870_vm2, %v859_v12  ;;  %v913_v14 = vmul.f32 1.442695, %v859_v12  ;;  %943 = vrot.lane.b32.xlu0 %v1301_v13, %s1328_s30 }
 0x292   : > { %v1305_v17 = vpop.eup %1304 }
 0x293   : > { %1316 = vpow2.f32 %v913_v14  ;;  %945 = vrot.lane.b32.xlu1 %v1303_v15, %s1328_s30 }
 0x294   : > { %1318 = vpow2.f32 %v917_v16 }
 0x295   : > { %955 = vrot.lane.b32.xlu0 %v1305_v17, %s1328_s30 }
 0x296   : > { %v1307_v18 = vpop.eup %1306 }
 0x297   : > { %957 = vrot.lane.b32.xlu1 %v1307_v18, %s1328_s30  ;;  %v1309_v19 = vpop.eup %1308 }
 0x298   : > { %v1311_v20 = vpop.eup %1310 }
 0x299   : > { %951 = vrot.lane.b32.xlu0 %v1309_v19, %s1328_s30 }
 0x29b   : > { %953 = vrot.lane.b32.xlu1 %v1311_v20, %s1328_s30 }
 0x29c   : > { %v1313_v21 = vpop.eup %1312 }
 0x29d   : > { %959 = vrot.lane.b32.xlu0 %v1313_v21, %s1328_s30  ;;  %v1315_v22 = vpop.eup %1314 }
 0x2a0   : > { %v1317_v23 = vpop.eup %1316 }
 0x2a1   : > { %961 = vrot.lane.b32.xlu1 %v1317_v23, %s1328_s30  ;;  %963 = vrot.lane.b32.xlu0 %v1315_v22, %s1328_s30  ;;  %v1319_v24 = vpop.eup %1318 }
 0x2a5   : > { %965 = vrot.lane.b32.xlu1 %v1319_v24, %s1328_s30 }
 0x2f5   : > { %v940_v25 = vpop.permute.xlu1 %939 }
 0x2f6   : > { %985 = vst.msk [vmem:[%s1573_s11 + $0x10] sm:$0xff] %vm870_vm2, %v940_v25 }
 0x2f7   : > { %v936_v26 = vpop.permute.xlu0 %935 }
 0x2f8   : > { %983 = vst.msk [vmem:[%s1573_s11] sm:$0xff] %vm870_vm2, %v936_v26 }
 0x2f9   : > { %v942_v27 = vpop.permute.xlu1 %941 }
 0x2fa   : > { %986 = vst.msk [vmem:[%s1573_s11 + $0x18] sm:$0xff] %vm870_vm2, %v942_v27 }
 0x2fb   : > { %v938_v28 = vpop.permute.xlu0 %937 }
 0x2fc   : > { %984 = vst.msk [vmem:[%s1573_s11 + $0x8] sm:$0xff] %vm870_vm2, %v938_v28 }
 0x2ff   : > { %v948_v29 = vpop.permute.xlu0 %947 }
 0x300   : > { %989 = vst.msk [vmem:[%s1573_s11 + $0x30] sm:$0xff] %vm870_vm2, %v948_v29 }
 0x301   : > { %v950_v30 = vpop.permute.xlu1 %949 }
 0x302   : > { %990 = vst.msk [vmem:[%s1573_s11 + $0x38] sm:$0xff] %vm870_vm2, %v950_v30 }
 0x303   : > { %v944_v31 = vpop.permute.xlu0 %943 }
 0x304   : > { %987 = vst.msk [vmem:[%s1573_s11 + $0x20] sm:$0xff] %vm870_vm2, %v944_v31 }
 0x305   : > { %v946_v32 = vpop.permute.xlu1 %945 }
 0x306   : > { %988 = vst.msk [vmem:[%s1573_s11 + $0x28] sm:$0xff] %vm870_vm2, %v946_v32 }
 0x307   : > { %v956_v33 = vpop.permute.xlu0 %955 }
 0x308   : > { %993 = vst.msk [vmem:[%s1573_s11 + $0x50] sm:$0xff] %vm870_vm2, %v956_v33 }
 0x309   : > { %v958_v34 = vpop.permute.xlu1 %957 }
 0x30a   : > { %994 = vst.msk [vmem:[%s1573_s11 + $0x58] sm:$0xff] %vm870_vm2, %v958_v34 }
 0x30b   : > { %v952_v35 = vpop.permute.xlu0 %951 }
 0x30c   : > { %991 = vst.msk [vmem:[%s1573_s11 + $0x40] sm:$0xff] %vm870_vm2, %v952_v35 }
 0x30d   : > { %v954_v36 = vpop.permute.xlu1 %953 }
 0x30e   : > { %992 = vst.msk [vmem:[%s1573_s11 + $0x48] sm:$0xff] %vm870_vm2, %v954_v36 }
 0x30f   : > { %v960_v37 = vpop.permute.xlu0 %959 }
 0x310   : > { %995 = vst.msk [vmem:[%s1573_s11 + $0x60] sm:$0xff] %vm870_vm2, %v960_v37 }
 0x313   : > { %v962_v38 = vpop.permute.xlu1 %961  ;;  %v964_v39 = vpop.permute.xlu0 %963 }
 0x314   : > { %996 = vst.msk [vmem:[%s1573_s11 + $0x68] sm:$0xff] %vm870_vm2, %v962_v38  ;;  %997 = vst.msk [vmem:[%s1573_s11 + $0x70] sm:$0xff] %vm870_vm2, %v964_v39 }
 0x317   : > { %v966_v40 = vpop.permute.xlu1 %965 }
 0x318   : > { %998 = vst.msk [vmem:[%s1573_s11 + $0x78] sm:$0xff] %vm870_vm2, %v966_v40 }
 0x319 PF: > { %s19_s27 = sadd.s32 1, %s1326_s27  }
 0x31a   : > { %p16_p4 = scmp.ge.s32.totalorder %s19_s27, 4  }
 0x31c   :  { %18 = sbr.rel (!%p16_p4) target bundleno = 1 (0x1), region = 90 }

</bundles_post_ra>
